<compile_context>
chip_gen: v6e
topology: v6e:2x2x1
jax: 0.10.0
libtpu: 0.0.40
codegen_flags: <defaults>
</compile_context>

<pallas_src>
import jax
import jax.numpy as jnp
import numpy as np
from jax.experimental import pallas as pl
from jax.experimental.pallas import tpu as pltpu


KS = 5                     # kernel size of every conv in the module
CIN = 6                    # channels of the grouped feature map
KD = KS * KS * CIN         # 150: shared im2col depth
KP = 160                   # KD + 1 (bias ones-column), rounded up to a multiple of 16
COUT_PAD = 128             # lane-dense padded output width (16 real columns)
TM_MAX = 2048              # max M tile (see VMEM budget in header)


def _round_up(v, m):
    return (v + m - 1) // m * m


def _fused_matmul_kernel(p_ref, w_ref, o_ref):
    # p_ref: (TM, KP)       bf16 im2col tile (ones column for the bias folded in)
    # w_ref: (KP, COUT_PAD) bf16 fused weights (bias row folded in, zero-padded cols)
    # o_ref: (TM, COUT_PAD) out_dtype (bf16 by default); f32 MXU accumulation.
    acc = jnp.dot(p_ref[...], w_ref[...], preferred_element_type=jnp.float32)
    o_ref[...] = acc.astype(o_ref.dtype)


def _embed_weight(w, cin_offset):
    """(cout, cin, k, k) OIHW weight -> (k*k*CIN, cout), rows ordered (kh, kw, cin),
    with the cin block placed at `cin_offset` inside the 6-channel patch layout."""
    cout, cin, k, _ = w.shape
    w_full = jnp.zeros((cout, CIN, k, k), w.dtype)
    w_full = w_full.at[:, cin_offset:cin_offset + cin].set(w)
    return jnp.transpose(w_full, (2, 3, 1, 0)).reshape(k * k * CIN, cout)


def pack_params(params, *, compute_dtype=jnp.bfloat16):
    """Parameter-only packing of the four convs into one (KP, COUT_PAD) matrix.
    Columns: [conv2 | conv3 | conv4 | conv1]; bias folded in as row KD; zero-padded
    to 128 lane-dense columns.  Compute ONCE per parameter set, not per forward."""
    (w1, b1), (w2, b2), (w3, b3), (w4, b4) = params
    w_cat = jnp.concatenate([_embed_weight(w2, 1), _embed_weight(w3, 2),
                             _embed_weight(w4, 0), _embed_weight(w1, 0)], axis=1)  # (KD, 16)
    b_cat = jnp.concatenate([b2, b3, b4, b1])[None, :]                              # (1, 16)
    n_real = w_cat.shape[1]
    w_all = jnp.concatenate([w_cat, b_cat], axis=0)                                 # (KD+1, 16)
    w_all = jnp.pad(w_all, ((0, KP - (KD + 1)), (0, COUT_PAD - n_real)))            # (KP, 128)
    return w_all.astype(compute_dtype)


def conv2d_special_grouping_forward(x, w_packed, *, out_dtype=jnp.bfloat16,
                                    compute_dtype=jnp.bfloat16, nchw_outputs=True):
    """Implied grouping forward over a 6-channel NCHW feature map (LeNet-5 C3 style).

    Returns (y1, y2, y3, y4) (NCHW by default; NHWC views if nchw_outputs=False):
      y1 = conv1(x[:, 0:3]), k=5, stride=2
      y2 = conv2(x[:, 1:4]), k=5, stride=1
      y3 = conv3(x[:, 2:5]), k=5, stride=1
      y4 = conv4(x[:, 0:6]), k=5, stride=1
    Inputs/weights are cast to bf16 for the MXU; accumulation is f32; outputs are
    `out_dtype` (bf16 default; pass jnp.float32 for full-precision outputs).
    """
    N, C, H, W = x.shape
    assert C == CIN
    OH, OW = H - KS + 1, W - KS + 1          # stride-1 output grid (conv2-4)
    M = N * OH * OW

    # ---- one shared stride-1, 6-channel im2col: rows = (n, oh, ow), cols = (kh, kw, cin).
    # Left as XLA ops; allow_input_fusion lets XLA fuse this producer into the Pallas
    # input DMA so the (M, KP) patch matrix need not round-trip through HBM.
    x_nhwc = jnp.transpose(x, (0, 2, 3, 1))
    cols = [x_nhwc[:, kh:kh + OH, kw:kw + OW, :] for kh in range(KS) for kw in range(KS)]
    patches = jnp.stack(cols, axis=3).reshape(M, KD)
    patches = jnp.concatenate(
        [patches,
         jnp.ones((M, 1), patches.dtype),           # bias ones-column (row KD of w_packed)
         jnp.zeros((M, KP - KD - 1), patches.dtype)],
        axis=1).astype(compute_dtype)                                   # (M, KP)

    # ---- M-tile selection.
    if M <= 1024:
        TM = M                       # single resident block; this regime is latency-bound
    else:
        # >= 2 parallel grid steps so both v7x TensorCores get work; cap the tile at TM_MAX.
        nblk = max(2, pl.cdiv(M, TM_MAX))
        TM = _round_up(pl.cdiv(M, nblk), 8)
    grid = (pl.cdiv(M, TM),)

    out_itemsize = jnp.dtype(out_dtype).itemsize
    cost = pl.CostEstimate(
        flops=2 * M * KP * COUT_PAD,
        transcendentals=0,
        bytes_accessed=(M * KP + KP * COUT_PAD) * 2 + M * COUT_PAD * out_itemsize,
    )

    out = pl.pallas_call(
        _fused_matmul_kernel,
        out_shape=jax.ShapeDtypeStruct((M, COUT_PAD), out_dtype),
        grid_spec=pl.GridSpec(
            grid=grid,
            in_specs=[
                pl.BlockSpec((TM, KP), lambda i: (i, 0)),          # patch row tile
                pl.BlockSpec((KP, COUT_PAD), lambda i: (0, 0)),    # fused weight, resident
            ],
            out_specs=pl.BlockSpec((TM, COUT_PAD), lambda i: (i, 0)),
        ),
        compiler_params=pltpu.CompilerParams(
            dimension_semantics=("parallel",),
            vmem_limit_bytes=32 * 1024 * 1024,
            allow_input_fusion=[True, False],       # fuse the im2col producer, not the weight
        ),
        cost_estimate=cost,
    )(patches, w_packed)

    # ---- epilogue: one transpose of the 16 real channels, then cheap channel slices.
    out = out.reshape(N, OH, OW, COUT_PAD)[..., :16]                 # (N, OH, OW, 16)
    if nchw_outputs:
        out_c = jnp.transpose(out, (0, 3, 1, 2))                     # (N, 16, OH, OW)
        y2 = out_c[:, 0:4]
        y3 = out_c[:, 4:8]
        y4 = out_c[:, 8:12]
        # conv1 (stride 2): its patches are exactly the even-position subset of the
        # stride-1 patch grid -> fold the stride-2 gather into this slice.
        y1 = out_c[:, 12:16, ::2, ::2]
    else:
        y2 = out[..., 0:4]
        y3 = out[..., 4:8]
        y4 = out[..., 8:12]
        y1 = out[:, ::2, ::2, 12:16]
    return y1, y2, y3, y4


def init_conv_params(key, cout, cin, k):
    """Deterministic PyTorch-style uniform init (fan_in based)."""
    kw_key, kb_key = jax.random.split(key)
    fan_in = cin * k * k
    bound = 1.0 / float(np.sqrt(fan_in))
    w = jax.random.uniform(kw_key, (cout, cin, k, k), jnp.float32, -bound, bound)
    b = jax.random.uniform(kb_key, (cout,), jnp.float32, -bound, bound)
    return w, b


def _ref_conv(x, w, b, stride, dtype=jnp.float32):
    out = jax.lax.conv_general_dilated(
        x.astype(dtype), w.astype(dtype), (stride, stride), "VALID",
        dimension_numbers=("NCHW", "OIHW", "NCHW"),
        preferred_element_type=jnp.float32)
    return out + b.astype(dtype).astype(jnp.float32).reshape(1, -1, 1, 1)


if __name__ == "__main__":
    key = jax.random.PRNGKey(0)
    k_x, k_x2, k1, k2, k3, k4 = jax.random.split(key, 6)

    params = (
        init_conv_params(k1, 4, 3, KS),   # conv1: 3 -> 4, k=5, stride 2
        init_conv_params(k2, 4, 3, KS),   # conv2: 3 -> 4, k=5, stride 1
        init_conv_params(k3, 4, 3, KS),   # conv3: 3 -> 4, k=5, stride 1
        init_conv_params(k4, 4, 6, KS),   # conv4: 6 -> 4, k=5, stride 1
    )
    # Parameter-only packing, hoisted out of the per-forward path.
    w_packed = jax.block_until_ready(pack_params(params))

    fwd = jax.jit(conv2d_special_grouping_forward)

    def check(x, ys):
        groups = [(x[:, 0:3], params[0], 2), (x[:, 1:4], params[1], 1),
                  (x[:, 2:5], params[2], 1), (x[:, 0:6], params[3], 1)]
        for y, (xi, (wi, bi), s) in zip(ys, groups):
            y32 = np.asarray(y.astype(jnp.float32))
            # vs XLA conv at the same precision (bf16 in, f32 accum); extra error is
            # only the bf16 output rounding.
            ref_bf16 = np.asarray(_ref_conv(xi, wi, bi, s, dtype=jnp.bfloat16))
            np.testing.assert_allclose(y32, ref_bf16, rtol=1e-2, atol=1e-2)
            # vs full-f32 reference (adds bf16 input rounding).
            ref_f32 = np.asarray(_ref_conv(xi, wi, bi, s, dtype=jnp.float32))
            np.testing.assert_allclose(y32, ref_f32, rtol=3e-2, atol=3e-2)

    # ---- small, latency-bound size: single resident block (grid=(1,)). ----
    N, C, H, W = 2, 6, 16, 16
    x = jax.random.normal(k_x, (N, C, H, W), jnp.float32)
    ys = jax.block_until_ready(fwd(x, w_packed))
    assert ys[0].shape == (N, 4, 6, 6), ys[0].shape
    assert ys[1].shape == (N, 4, 12, 12), ys[1].shape
    assert ys[2].shape == (N, 4, 12, 12), ys[2].shape
    assert ys[3].shape == (N, 4, 12, 12), ys[3].shape
    check(x, ys)

    # ---- larger size exercising the tiled path: M = 2*37*37 = 2738 > 1024 ->
    # 2 "parallel" grid steps (both v7x TensorCores) and a ragged last tile. ----
    H2 = W2 = 41
    x2 = jax.random.normal(k_x2, (N, C, H2, W2), jnp.float32)
    ys2 = jax.block_until_ready(fwd(x2, w_packed))
    assert ys2[0].shape == (N, 4, 19, 19), ys2[0].shape
    assert ys2[1].shape == (N, 4, 37, 37), ys2[1].shape
    check(x2, ys2)

    print("KERNEL_OK")
</pallas_src>

<mosaic_0001>
module attributes {stable_mosaic.version = 11 : i64} {
  func.func @_fused_matmul_kernel(%arg0: i32, %arg1: memref<288x160xbf16, #tpu.memory_space<vmem>>, %arg2: memref<160x128xbf16, #tpu.memory_space<vmem>>, %arg3: memref<288x128xbf16, #tpu.memory_space<vmem>>) attributes {dimension_semantics = [#tpu.dimension_semantics<parallel>], iteration_bounds = array<i64: 1>, scalar_prefetch = 0 : i64, scratch_operands = 0 : i64, tpu.core_type = #tpu.core_type<tc>, window_params = [{transform_indices = @transform_0, window_bounds = array<i64: 288, 160>}, {pipeline_mode = #tpu.pipeline_mode<synchronous>, transform_indices = @transform_1, window_bounds = array<i64: 160, 128>}, {transform_indices = @transform_2, window_bounds = array<i64: 288, 128>}]} {
    %c0 = arith.constant 0 : index
    %c0_0 = arith.constant 0 : index
    %0 = vector.load %arg1[%c0, %c0_0] : memref<288x160xbf16, #tpu.memory_space<vmem>>, vector<288x160xbf16>
    %c0_1 = arith.constant 0 : index
    %c0_2 = arith.constant 0 : index
    %1 = vector.load %arg2[%c0_1, %c0_2] : memref<160x128xbf16, #tpu.memory_space<vmem>>, vector<160x128xbf16>
    %cst = arith.constant dense<0.000000e+00> : vector<288x128xf32>
    %2 = tpu.matmul %0, %1, %cst {dimension_numbers = #tpu.dot_dimension_numbers<[1], [0], [0], [1], [0, 0, 1, 1], [], []>} : vector<288x160xbf16>, vector<160x128xbf16>, vector<288x128xf32> -> vector<288x128xf32>
    %3 = arith.truncf %2 : vector<288x128xf32> to vector<288x128xbf16>
    %c0_3 = arith.constant 0 : index
    %c0_4 = arith.constant 0 : index
    %4 = vector.load %arg3[%c0_3, %c0_4] : memref<288x128xbf16, #tpu.memory_space<vmem>>, vector<288x128xbf16>
    tpu.vector_store %arg3[%c0_3, %c0_4], %3 {strides = array<i32>} : memref<288x128xbf16, #tpu.memory_space<vmem>>, vector<288x128xbf16>,
    return
  }
  func.func @transform_0(%arg0: i32) -> (i32, i32) {
    %c0_i32 = arith.constant 0 : i32
    %c0_i32_0 = arith.constant 0 : i32
    return %arg0, %c0_i32 : i32, i32
  }
  func.func @transform_1(%arg0: i32) -> (i32, i32) {
    %c0_i32 = arith.constant 0 : i32
    %c0_i32_0 = arith.constant 0 : i32
    %c0_i32_1 = arith.constant 0 : i32
    return %c0_i32, %c0_i32_0 : i32, i32
  }
  func.func @transform_2(%arg0: i32) -> (i32, i32) {
    %c0_i32 = arith.constant 0 : i32
    %c0_i32_0 = arith.constant 0 : i32
    return %arg0, %c0_i32 : i32, i32
  }
}

</mosaic_0001>

<bundles_post_ra>
// kernel: conv2d_special_grouping_forward.2
= control target key start
LH: loop header
LB: loop body
LE: loop exit
PB: predicated region body
PF: predicated region fallthrough
CT: control target
= control target key end

     0   :  { %s3652_s0 = inlined_call_operand.vmem [shape: bf16[160,128], index: 0, kind: input, shape index: {}]   ;;  %s3653_s1 = inlined_call_operand.vmem [shape: bf16[288,150], index: 1, kind: input, shape index: {}]   ;;  %s3654_s2 = inlined_call_operand.<no memory space> [shape: bf16[], index: 2, kind: input, shape index: {}]   ;;  %s3655_s3 = inlined_call_operand.vmem [shape: bf16[160], index: 3, kind: input, shape index: {}]   ;;  %s3656_s4 = inlined_call_operand.vmem [shape: bf16[160], index: 4, kind: input, shape index: {}]   ;;  %s3657_s5 = inlined_call_operand.vmem [shape: bf16[288,128], index: 5, kind: output, shape index: {}]  }
   0x1   :  { %v10_v0 = vstv %s3654_s2 }
   0x2   :  { %v3079_v1 = vunpack.i.l.bf16 %v10_v0 }
   0x3   :  { %v2980_v2 = vld [vmem:[%s3652_s0 + $0x38] sm:$0xff]   ;;  %v66_v3 = vlaneseq  ;;  %v3044_v4 = vmov 0   ;;  %v2981_v5 = vld [vmem:[%s3652_s0 + $0x30] sm:$0xff]   ;;  %v2982_v7 = vld [vmem:[%s3652_s0 + $0x28] sm:$0xff]   ;;  %v3045_v42 = vmov 0.0   ;;  %vm2228_vm1 = vcmask 261120  }
   0x4   :  { %2283 = vmatprep.subr.bf16.mxu0 %v3044_v4  ;;  %2958 = vmatprep.subr.bf16.mxu1 %v3044_v4  ;;  %v2983_v9 = vld [vmem:[%s3652_s0 + $0x20] sm:$0xff]   ;;  %v2645_v17 = vld [vmem:[%s3653_s1 + $0x8] sm:$0xff]   ;;  %v2679_v18 = vld [vmem:[%s3653_s1 + $0x90] sm:$0xff]  }
   0x5   :  { %2284 = vmatpush1.bf16.msra.mxu0 %v2980_v2  ;;  %2968 = vmatpush1.bf16.msra.mxu1 %v2980_v2  ;;  %v67_v6 = vand.u32 127, %v66_v3  ;;  %v23_v10 = vld [vmem:[%s3653_s1] sm:$0xff]   ;;  %v2681_v19 = vld [vmem:[%s3653_s1 + $0x98] sm:$0xff]   ;;  %v96_v22 = vunpack.c.l.bf16 %v2645_v17  ;;  %v127_v23 = vunpack.c.h.bf16 %v2645_v17  ;;  %v997_v26 = vunpack.c.l.bf16 %v2679_v18  ;;  %v2647_v37 = vld [vmem:[%s3653_s1 + $0x10] sm:$0xff]  }
   0x6   :  { %2285 = vmatprep.subr.bf16.mxu0 %v3044_v4  ;;  %2959 = vmatprep.subr.bf16.mxu1 %v3044_v4  ;;  %v31_v11 = vld [vmem:[%s3655_s3] ss:$0 sm:$0xff]  ;;  %v24_v13 = vunpack.c.l.bf16 %v23_v10  ;;  %v64_v16 = vunpack.c.h.bf16 %v23_v10  ;;  %v1028_v27 = vunpack.c.h.bf16 %v2679_v18  ;;  %v2984_v28 = vld [vmem:[%s3652_s0 + $0x18] sm:$0xff]   ;;  %v1050_v32 = vunpack.c.l.bf16 %v2681_v19  ;;  %v2985_v48 = vld [vmem:[%s3652_s0 + $0x10] sm:$0xff]  }
   0x7   :  { %v3094_v8 = vadd.s32 128, %v67_v6  ;;  %v36_v12 = vld [vmem:[%s3656_s4] ss:$0 sm:$0xff]  ;;  %v3113_v14 = vunpack.i.l.bf16 %v31_v11  ;;  %v3126_v20 = vunpack.i.h.bf16 %v31_v11  ;;  %v1081_v36 = vunpack.c.h.bf16 %v2681_v19  ;;  %v2649_v47 = vld [vmem:[%s3653_s1 + $0x18] sm:$0xff]   ;;  %v2685_v62 = vld [vmem:[%s3653_s1 + $0xa8] sm:$0xff]  }
   0x8   :  { %v3115_v15 = vunpack.i.l.bf16 %v36_v12  ;;  %v3128_v21 = vunpack.i.h.bf16 %v36_v12  ;;  %v149_v52 = vunpack.c.l.bf16 %v2647_v37  ;;  %v180_v56 = vunpack.c.h.bf16 %v2647_v37  ;;  %v2683_v57 = vld [vmem:[%s3653_s1 + $0xa0] sm:$0xff]  }
   0x9   :  { %2286 = vmatpush1.bf16.msra.mxu0 %v2981_v5  ;;  %2969 = vmatpush1.bf16.msra.mxu1 %v2981_v5  ;;  %vm69_vm0 = vcmp.lt.s32.totalorder %v3094_v8, 150  ;;  %v202_v61 = vunpack.c.l.bf16 %v2649_v47  ;;  %v233_v3 = vunpack.c.h.bf16 %v2649_v47  ;;  %v2986_v5 = vld [vmem:[%s3652_s0 + $0x8] sm:$0xff]   ;;  %v1103_v10 = vunpack.c.l.bf16 %v2683_v57 }
   0xa   :  { %2287 = vmatprep.subr.bf16.mxu0 %v3044_v4  ;;  %2960 = vmatprep.subr.bf16.mxu1 %v3044_v4  ;;  %v43_v24 = vmax.f32 %v24_v13, %v3115_v15  ;;  %v70_v25 = vsel %vm69_vm0, %v64_v16, %v3079_v1  ;;  %v105_v30 = vmax.f32 %v96_v22, %v3115_v15  ;;  %v1134_v13 = vunpack.c.h.bf16 %v2683_v57 }
   0xb   :  { %v83_v29 = vmax.f32 %v70_v25, %v3128_v21  ;;  %v133_v31 = vsel %vm69_vm0, %v127_v23, %v3079_v1  ;;  %v1006_v35 = vmax.f32 %v997_v26, %v3115_v15  ;;  %v1034_v40 = vsel %vm69_vm0, %v1028_v27, %v3079_v1  ;;  %v2651_v23 = vld [vmem:[%s3653_s1 + $0x20] sm:$0xff]  }
   0xc   :  { %v47_v33 = vmax.f32 %v43_v24, %v3113_v14  ;;  %v136_v34 = vmax.f32 %v133_v31, %v3128_v21  ;;  %v109_v39 = vmax.f32 %v105_v30, %v3113_v14  ;;  %v1059_v41 = vmax.f32 %v1050_v32, %v3115_v15 }
   0xd   :  { %2288 = vmatpush1.bf16.msra.mxu0 %v2982_v7  ;;  %2970 = vmatpush1.bf16.msra.mxu1 %v2982_v7  ;;  %v87_v38 = vmax.f32 %v83_v29, %v3126_v20  ;;  %v1010_v45 = vmax.f32 %v1006_v35, %v3113_v14  ;;  %v1037_v46 = vmax.f32 %v1034_v40, %v3128_v21  ;;  %v1156_v16 = vunpack.c.l.bf16 %v2685_v62  ;;  %v2987_v29 = vld [vmem:[%s3652_s0] sm:$0xff]  }
   0xe   :  { %2289 = vmatprep.subr.bf16.mxu0 %v3044_v4  ;;  %2961 = vmatprep.subr.bf16.mxu1 %v3044_v4  ;;  %v49_v43 = vpack.c.bf16 %v3045_v42, %v47_v33  ;;  %v140_v44 = vmax.f32 %v136_v34, %v3126_v20  ;;  %v112_v50 = vpack.c.bf16 %v3045_v42, %v109_v39  ;;  %v1187_v33 = vunpack.c.h.bf16 %v2685_v62 }
   0xf   :  { %v90_v49 = vpack.c.bf16 %v3045_v42, %v87_v38  ;;  %v1063_v51 = vmax.f32 %v1059_v41, %v3113_v14  ;;  %v1013_v54 = vpack.c.bf16 %v3045_v42, %v1010_v45  ;;  %v1041_v55 = vmax.f32 %v1037_v46, %v3126_v20 }
  0x10   :  { %52 = vst [vmem:[#allocation7] sm:$0xf] %v49_v43  ;;  %v143_v53 = vpack.c.bf16 %v3045_v42, %v140_v44  ;;  %115 = vst [vmem:[#allocation7 + $0x8] sm:$0xf] %v112_v50  ;;  %v1087_v59 = vsel %vm69_vm0, %v1081_v36, %v3079_v1  ;;  %v158_v60 = vmax.f32 %v149_v52, %v3115_v15  ;;  %v255_v37 = vunpack.c.l.bf16 %v2651_v23  ;;  %v2687_v44 = vld [vmem:[%s3653_s1 + $0xb0] sm:$0xff]  }
  0x11   :  { %2290 = vmatpush1.bf16.msra.mxu0 %v2983_v9  ;;  %2971 = vmatpush1.bf16.msra.mxu1 %v2983_v9  ;;  %93 = vst [vmem:[#allocation7 + $0x4] sm:$0xf] %v90_v49  ;;  %v1066_v58 = vpack.c.bf16 %v3045_v42, %v1063_v51  ;;  %1016 = vst [vmem:[#allocation7 + $0x90] sm:$0xf] %v1013_v54  ;;  %v1044_v63 = vpack.c.bf16 %v3045_v42, %v1041_v55  ;;  %v286_v41 = vunpack.c.h.bf16 %v2651_v23  ;;  %v2988_v49 = vld [vmem:[%s3652_s0 + $0x48] sm:$0xff]  }
  0x12   :  { %2291 = vmatprep.subr.bf16.mxu0 %v3044_v4  ;;  %2962 = vmatprep.subr.bf16.mxu1 %v3044_v4  ;;  %146 = vst [vmem:[#allocation7 + $0xc] sm:$0xf] %v143_v53  ;;  %v1090_v0 = vmax.f32 %v1087_v59, %v3128_v21  ;;  %v186_v2 = vsel %vm69_vm0, %v180_v56, %v3079_v1  ;;  %v1209_v57 = vunpack.c.l.bf16 %v2687_v44  ;;  %v1240_v62 = vunpack.c.h.bf16 %v2687_v44 }
  0x13   :  { %1069 = vst [vmem:[#allocation7 + $0x98] sm:$0xf] %v1066_v58  ;;  %v162_v6 = vmax.f32 %v158_v60, %v3113_v14  ;;  %v189_v7 = vmax.f32 %v186_v2, %v3128_v21  ;;  %v211_v9 = vmax.f32 %v202_v61, %v3115_v15  ;;  %1047 = vst [vmem:[#allocation7 + $0x94] sm:$0xf] %v1044_v63  ;;  %v2689_v58 = vld [vmem:[%s3653_s1 + $0xb8] sm:$0xff]   ;;  %v2989_v63 = vld [vmem:[%s3652_s0 + $0x40] sm:$0xff]  }
  0x14   :  { %v1094_v11 = vmax.f32 %v1090_v0, %v3126_v20  ;;  %v239_v12 = vsel %vm69_vm0, %v233_v3, %v3079_v1  ;;  %v1112_v25 = vmax.f32 %v1103_v10, %v3115_v15  ;;  %v1140_v26 = vsel %vm69_vm0, %v1134_v13, %v3079_v1  ;;  %v2657_v13 = vld [vmem:[%s3653_s1 + $0x38] sm:$0xff]  }
  0x15   :  { %2292 = vmatpush1.bf16.msra.mxu0 %v2984_v28  ;;  %2972 = vmatpush1.bf16.msra.mxu1 %v2984_v28  ;;  %v165_v17 = vpack.c.bf16 %v3045_v42, %v162_v6  ;;  %v193_v18 = vmax.f32 %v189_v7, %v3126_v20  ;;  %v215_v19 = vmax.f32 %v211_v9, %v3113_v14  ;;  %v2653_v28 = vld [vmem:[%s3653_s1 + $0x28] sm:$0xff]   ;;  %v2655_v6 = vld [vmem:[%s3653_s1 + $0x30] sm:$0xff]  }
  0x16   :  { %2293 = vmatprep.subr.bf16.mxu0 %v3044_v4  ;;  %2963 = vmatprep.subr.bf16.mxu1 %v3044_v4  ;;  %v242_v22 = vmax.f32 %v239_v12, %v3128_v21  ;;  %v1097_v24 = vpack.c.bf16 %v3045_v42, %v1094_v11  ;;  %v1165_v27 = vmax.f32 %v1156_v16, %v3115_v15  ;;  %v308_v43 = vunpack.c.l.bf16 %v2653_v28 }
  0x17   :  { %168 = vst [vmem:[#allocation7 + $0x10] sm:$0xf] %v165_v17  ;;  %v196_v30 = vpack.c.bf16 %v3045_v42, %v193_v18  ;;  %v218_v31 = vpack.c.bf16 %v3045_v42, %v215_v19  ;;  %v1116_v34 = vmax.f32 %v1112_v25, %v3113_v14  ;;  %v1143_v35 = vmax.f32 %v1140_v26, %v3128_v21  ;;  %v2990_v26 = vld [vmem:[#allocation7] ss:$8 sps:$4 sm:$0xff]  }
  0x18   :  { %v246_v32 = vmax.f32 %v242_v22, %v3126_v20  ;;  %1100 = vst [vmem:[#allocation7 + $0x9c] sm:$0xf] %v1097_v24  ;;  %v1169_v36 = vmax.f32 %v1165_v27, %v3113_v14  ;;  %v1193_v40 = vsel %vm69_vm0, %v1187_v33, %v3079_v1  ;;  %v264_v50 = vmax.f32 %v255_v37, %v3115_v15 }
  0x19   :  { %2294 = vmatpush1.bf16.msra.mxu0 %v2985_v48  ;;  %2973 = vmatpush1.bf16.msra.mxu1 %v2985_v48  ;;  %v2992_v38 = vld [vmem:[#allocation7 + $0x4] ss:$8 sps:$4 sm:$0xff]   ;;  %199 = vst [vmem:[#allocation7 + $0x14] sm:$0xf] %v196_v30  ;;  %221 = vst [vmem:[#allocation7 + $0x18] sm:$0xf] %v218_v31  ;;  %v1119_v45 = vpack.c.bf16 %v3045_v42, %v1116_v34  ;;  %v1147_v46 = vmax.f32 %v1143_v35, %v3126_v20  ;;  %v339_v53 = vunpack.c.h.bf16 %v2653_v28 }
  0x1a   :  { %2295 = vmatprep.subr.bf16.mxu0 %v3044_v4  ;;  %2964 = vmatprep.subr.bf16.mxu1 %v3044_v4  ;;  %v249_v39 = vpack.c.bf16 %v3045_v42, %v246_v32  ;;  %v1172_v47 = vpack.c.bf16 %v3045_v42, %v1169_v36  ;;  %v1196_v48 = vmax.f32 %v1193_v40, %v3128_v21  ;;  %v1262_v12 = vunpack.c.l.bf16 %v2689_v58  ;;  %v2993_v27 = vld [vmem:[#allocation7 + $0x90] ss:$8 sps:$4 sm:$0xff]  }
  0x1b   :  { %v292_v51 = vsel %vm69_vm0, %v286_v41, %v3079_v1  ;;  %v317_v52 = vmax.f32 %v308_v43, %v3115_v15  ;;  %1122 = vst [vmem:[#allocation7 + $0xa0] sm:$0xf] %v1119_v45  ;;  %v1150_v54 = vpack.c.bf16 %v3045_v42, %v1147_v46  ;;  %2761 = vmatprep.mubr.msk.bf16.mxu0 %vm2228_vm1, %v2992_v38  ;;  %v1293_v19 = vunpack.c.h.bf16 %v2689_v58  ;;  %v2693_v46 = vld [vmem:[%s3653_s1 + $0xc8] sm:$0xff]  }
  0x1c   :  { %252 = vst [vmem:[#allocation7 + $0x1c] sm:$0xf] %v249_v39  ;;  %1175 = vst [vmem:[#allocation7 + $0xa8] sm:$0xf] %v1172_v47  ;;  %v1200_v55 = vmax.f32 %v1196_v48, %v3126_v20  ;;  %v295_v56 = vmax.f32 %v292_v51, %v3128_v21  ;;  %v268_v59 = vmax.f32 %v264_v50, %v3113_v14  ;;  %v361_v24 = vunpack.c.l.bf16 %v2655_v6 }
  0x1d   :  { %2296 = vmatpush1.bf16.msra.mxu0 %v2986_v5  ;;  %2974 = vmatpush1.bf16.msra.mxu1 %v2986_v5  ;;  %v321_v60 = vmax.f32 %v317_v52, %v3113_v14  ;;  %v345_v61 = vsel %vm69_vm0, %v339_v53, %v3079_v1  ;;  %1153 = vst [vmem:[#allocation7 + $0xa4] sm:$0xf] %v1150_v54  ;;  %v392_v25 = vunpack.c.h.bf16 %v2655_v6  ;;  %v414_v31 = vunpack.c.l.bf16 %v2657_v13 }
  0x1e   :  { %2297 = vmatprep.subr.bf16.mxu0 %v3044_v4  ;;  %2965 = vmatprep.subr.bf16.mxu1 %v3044_v4  ;;  %v1203_v0 = vpack.c.bf16 %v3045_v42, %v1200_v55  ;;  %v299_v2 = vmax.f32 %v295_v56, %v3126_v20  ;;  %v348_v3 = vmax.f32 %v345_v61, %v3128_v21  ;;  %v445_v36 = vunpack.c.h.bf16 %v2657_v13  ;;  %v2659_v56 = vld [vmem:[%s3653_s1 + $0x40] sm:$0xff]   ;;  %v2661_v61 = vld [vmem:[%s3653_s1 + $0x48] sm:$0xff]  }
  0x1f   :  { %v1218_v5 = vmax.f32 %v1209_v57, %v3115_v15  ;;  %v2995_v7 = vld [vmem:[#allocation7 + $0x94] ss:$8 sps:$4 sm:$0xff]   ;;  %v271_v9 = vpack.c.bf16 %v3045_v42, %v268_v59  ;;  %v324_v10 = vpack.c.bf16 %v3045_v42, %v321_v60  ;;  %v1246_v11 = vsel %vm69_vm0, %v1240_v62, %v3079_v1 }
  0x20   :  { %1206 = vst [vmem:[#allocation7 + $0xac] sm:$0xf] %v1203_v0  ;;  %v302_v16 = vpack.c.bf16 %v3045_v42, %v299_v2  ;;  %v352_v17 = vmax.f32 %v348_v3, %v3126_v20  ;;  %2770 = vmatprep.mubr.msk.bf16.mxu1 %vm2228_vm1, %v2995_v7  ;;  %v1249_v22 = vmax.f32 %v1246_v11, %v3128_v21  ;;  %v1368_v60 = vunpack.c.l.bf16 %v2693_v46  ;;  %v3000_v3 = vld [vmem:[#allocation7 + $0x10] ss:$8 sps:$4 sm:$0xff]  }
  0x21   :  { %2298 = vmatpush1.bf16.msra.mxu0 %v2987_v29  ;;  %2975 = vmatpush1.bf16.msra.mxu1 %v2987_v29  ;;  %v1222_v18 = vmax.f32 %v1218_v5, %v3113_v14  ;;  %274 = vst [vmem:[#allocation7 + $0x20] sm:$0xf] %v271_v9  ;;  %327 = vst [vmem:[#allocation7 + $0x28] sm:$0xf] %v324_v10  ;;  %v1271_v23 = vmax.f32 %v1262_v12, %v3115_v15  ;;  %v1399_v7 = vunpack.c.h.bf16 %v2693_v46 }
  0x22   :  { %2311 = vmatprep.subr.bf16.mxu0 %v3044_v4  ;;  %2966 = vmatprep.subr.bf16.mxu1 %v3044_v4  ;;  %305 = vst [vmem:[#allocation7 + $0x24] sm:$0xf] %v302_v16  ;;  %v355_v28 = vpack.c.bf16 %v3045_v42, %v352_v17  ;;  %v1299_v30 = vsel %vm69_vm0, %v1293_v19, %v3079_v1  ;;  %v467_v9 = vunpack.c.l.bf16 %v2659_v56  ;;  %v498_v10 = vunpack.c.h.bf16 %v2659_v56 }
  0x23   :  { %v1225_v29 = vpack.c.bf16 %v3045_v42, %v1222_v18  ;;  %v2996_v32 = vld [vmem:[#allocation7 + $0x14] ss:$8 sps:$4 sm:$0xff]   ;;  %v1253_v33 = vmax.f32 %v1249_v22, %v3126_v20  ;;  %v1275_v34 = vmax.f32 %v1271_v23, %v3113_v14  ;;  %v1302_v35 = vmax.f32 %v1299_v30, %v3128_v21  ;;  %v3001_v5 = vld [vmem:[#allocation7 + $0xa0] ss:$8 sps:$4 sm:$0xff]  }
  0x24   :  { %358 = vst [vmem:[#allocation7 + $0x2c] sm:$0xf] %v355_v28  ;;  %v370_v37 = vmax.f32 %v361_v24, %v3115_v15  ;;  %v398_v38 = vsel %vm69_vm0, %v392_v25, %v3079_v1  ;;  %v423_v39 = vmax.f32 %v414_v31, %v3115_v15  ;;  %v1377_v6 = vmax.f32 %v1368_v60, %v3115_v15  ;;  %v2695_v18 = vld [vmem:[%s3653_s1 + $0xd0] sm:$0xff]   ;;  %v2697_v28 = vld [vmem:[%s3653_s1 + $0xd8] sm:$0xff]  }
  0x25   :  { %2312 = vmatpush2.bf16.msra.mxu0 %v2988_v49  ;;  %2976 = vmatpush2.bf16.msra.mxu1 %v2988_v49  ;;  %1228 = vst [vmem:[#allocation7 + $0xb0] sm:$0xf] %v1225_v29  ;;  %v1256_v41 = vpack.c.bf16 %v3045_v42, %v1253_v33  ;;  %v1278_v43 = vpack.c.bf16 %v3045_v42, %v1275_v34  ;;  %v520_v17 = vunpack.c.l.bf16 %v2661_v61  ;;  %v551_v31 = vunpack.c.h.bf16 %v2661_v61 }
  0x26   :  { %2313 = vmatprep.subr.bf16.mxu0 %v3044_v4  ;;  %2967 = vmatprep.subr.bf16.mxu1 %v3044_v4  ;;  %v2691_v4 = vld [vmem:[%s3653_s1 + $0xc0] sm:$0xff]   ;;  %v1306_v44 = vmax.f32 %v1302_v35, %v3126_v20  ;;  %v401_v45 = vmax.f32 %v398_v38, %v3128_v21  ;;  %v374_v47 = vmax.f32 %v370_v37, %v3113_v14 }
  0x27   :  { %v1315_v40 = vunpack.c.l.bf16 %v2691_v4  ;;  %v427_v48 = vmax.f32 %v423_v39, %v3113_v14  ;;  %v451_v49 = vsel %vm69_vm0, %v445_v36, %v3079_v1  ;;  %v1346_v50 = vunpack.c.h.bf16 %v2691_v4  ;;  %v2998_v51 = vld [vmem:[#allocation7 + $0xa4] ss:$8 sps:$4 sm:$0xff]   ;;  %1259 = vst [vmem:[#allocation7 + $0xb4] sm:$0xf] %v1256_v41  ;;  %1281 = vst [vmem:[#allocation7 + $0xb8] sm:$0xf] %v1278_v43 }
  0x28   :  { %v1309_v52 = vpack.c.bf16 %v3045_v42, %v1306_v44  ;;  %v405_v53 = vmax.f32 %v401_v45, %v3126_v20  ;;  %v454_v54 = vmax.f32 %v451_v49, %v3128_v21  ;;  %v377_v57 = vpack.c.bf16 %v3045_v42, %v374_v47  ;;  %v2663_v43 = vld [vmem:[%s3653_s1 + $0x50] sm:$0xff]   ;;  %v3006_v49 = vld [vmem:[#allocation7 + $0x20] ss:$8 sps:$4 sm:$0xff]  }
  0x29   :  { %2314 = vmatpush2.bf16.msra.mxu0 %v2989_v63  ;;  %2977 = vmatpush2.bf16.msra.mxu1 %v2989_v63  ;;  %v1324_v55 = vmax.f32 %v1315_v40, %v3115_v15  ;;  %v430_v58 = vpack.c.bf16 %v3045_v42, %v427_v48  ;;  %v1352_v59 = vsel %vm69_vm0, %v1346_v50, %v3079_v1  ;;  %v1452_v36 = vunpack.c.h.bf16 %v2695_v18  ;;  %v2665_v48 = vld [vmem:[%s3653_s1 + $0x58] sm:$0xff]  }
  0x2a   :  { %1312 = vst [vmem:[#allocation7 + $0xbc] sm:$0xf] %v1309_v52  ;;  %v408_v62 = vpack.c.bf16 %v3045_v42, %v405_v53  ;;  %v458_v63 = vmax.f32 %v454_v54, %v3126_v20  ;;  %v1355_v2 = vmax.f32 %v1352_v59, %v3128_v21  ;;  %380 = vst [vmem:[#allocation7 + $0x30] sm:$0xf] %v377_v57  ;;  %v1474_v41 = vunpack.c.l.bf16 %v2697_v28 }
  0x2b   :  { %v1328_v0 = vmax.f32 %v1324_v55, %v3113_v14  ;;  %433 = vst [vmem:[#allocation7 + $0x38] sm:$0xf] %v430_v58  ;;  %v3002_v11 = vld [vmem:[#allocation7 + $0x24] ss:$8 sps:$4 sm:$0xff]   ;;  %v1381_v19 = vmax.f32 %v1377_v6, %v3113_v14  ;;  %v1405_v22 = vsel %vm69_vm0, %v1399_v7, %v3079_v1  ;;  %v476_v23 = vmax.f32 %v467_v9, %v3115_v15 }
  0x2c   :  { %2316 = vmatmul.mubr.bf16.vlgmr.msra.gmra.mxu0 %v2990_v26  ;;  %2388 = vmatmul.mubr.bf16.vlgmr.msra.gmra.mxu1 %v2993_v27  ;;  %411 = vst [vmem:[#allocation7 + $0x34] sm:$0xf] %v408_v62  ;;  %v461_v12 = vpack.c.bf16 %v3045_v42, %v458_v63  ;;  %v1359_v16 = vmax.f32 %v1355_v2, %v3126_v20  ;;  %v1505_v54 = vunpack.c.h.bf16 %v2697_v28  ;;  %v573_v57 = vunpack.c.l.bf16 %v2663_v43  ;;  %v2699_v6 = vld [vmem:[%s3653_s1 + $0xe0] sm:$0xff]  }
  0x2d   :  { %2762 = vmatprep.mubr.msk.bf16.mxu0 %vm2228_vm1, %v2996_v32  ;;  %2771 = vmatprep.mubr.msk.bf16.mxu1 %vm2228_vm1, %v2998_v51  ;;  %v1331_v13 = vpack.c.bf16 %v3045_v42, %v1328_v0  ;;  %v504_v24 = vsel %vm69_vm0, %v498_v10, %v3079_v1  ;;  %v1408_v4 = vmax.f32 %v1405_v22, %v3128_v21  ;;  %v1421_v32 = vunpack.c.l.bf16 %v2695_v18  ;;  %v2701_v18 = vld [vmem:[%s3653_s1 + $0xe8] sm:$0xff]  }
  0x2e   :  { %464 = vst [vmem:[#allocation7 + $0x3c] sm:$0xf] %v461_v12  ;;  %v1362_v25 = vpack.c.bf16 %v3045_v42, %v1359_v16  ;;  %v507_v26 = vmax.f32 %v504_v24, %v3128_v21  ;;  %v529_v27 = vmax.f32 %v520_v17, %v3115_v15  ;;  %v1384_v29 = vpack.c.bf16 %v3045_v42, %v1381_v19  ;;  %v3007_v50 = vld [vmem:[#allocation7 + $0xb0] ss:$8 sps:$4 sm:$0xff]  }
  0x2f   :  { %1334 = vst [vmem:[#allocation7 + $0xc0] sm:$0xf] %v1331_v13  ;;  %v480_v30 = vmax.f32 %v476_v23, %v3113_v14  ;;  %v1412_v33 = vmax.f32 %v1408_v4, %v3126_v20  ;;  %v557_v39 = vsel %vm69_vm0, %v551_v31, %v3079_v1  ;;  %v1430_v40 = vmax.f32 %v1421_v32, %v3115_v15 }
  0x30   :  { %1365 = vst [vmem:[#allocation7 + $0xc4] sm:$0xf] %v1362_v25  ;;  %v511_v34 = vmax.f32 %v507_v26, %v3126_v20  ;;  %v533_v35 = vmax.f32 %v529_v27, %v3113_v14  ;;  %1387 = vst [vmem:[#allocation7 + $0xc8] sm:$0xf] %v1384_v29  ;;  %v560_v47 = vmax.f32 %v557_v39, %v3128_v21  ;;  %v604_v58 = vunpack.c.h.bf16 %v2663_v43  ;;  %v2667_v29 = vld [vmem:[%s3653_s1 + $0x60] sm:$0xff]  }
  0x31   :  { %v3004_v37 = vld [vmem:[#allocation7 + $0xb4] ss:$8 sps:$4 sm:$0xff]   ;;  %v483_v38 = vpack.c.bf16 %v3045_v42, %v480_v30  ;;  %v1415_v44 = vpack.c.bf16 %v3045_v42, %v1412_v33  ;;  %v1434_v51 = vmax.f32 %v1430_v40, %v3113_v14  ;;  %v1458_v52 = vsel %vm69_vm0, %v1452_v36, %v3079_v1  ;;  %v2669_v30 = vld [vmem:[%s3653_s1 + $0x68] sm:$0xff]  }
  0x32   :  { %v514_v45 = vpack.c.bf16 %v3045_v42, %v511_v34  ;;  %v536_v46 = vpack.c.bf16 %v3045_v42, %v533_v35  ;;  %v1483_v53 = vmax.f32 %v1474_v41, %v3115_v15  ;;  %v564_v55 = vmax.f32 %v560_v47, %v3126_v20  ;;  %v3012_v25 = vld [vmem:[#allocation7 + $0x30] ss:$8 sps:$4 sm:$0xff]  }
  0x33   :  { %486 = vst [vmem:[#allocation7 + $0x40] sm:$0xf] %v483_v38  ;;  %1418 = vst [vmem:[#allocation7 + $0xcc] sm:$0xf] %v1415_v44  ;;  %v1461_v56 = vmax.f32 %v1458_v52, %v3128_v21  ;;  %v1437_v60 = vpack.c.bf16 %v3045_v42, %v1434_v51  ;;  %v1511_v62 = vsel %vm69_vm0, %v1505_v54, %v3079_v1  ;;  %v626_v63 = vunpack.c.l.bf16 %v2665_v48 }
  0x34   :  { %2324 = vmatmul.mubr.bf16.gmra.mxu0 %v3000_v3  ;;  %2396 = vmatmul.mubr.bf16.gmra.mxu1 %v3001_v5  ;;  %517 = vst [vmem:[#allocation7 + $0x44] sm:$0xf] %v514_v45  ;;  %539 = vst [vmem:[#allocation7 + $0x48] sm:$0xf] %v536_v46  ;;  %v1487_v61 = vmax.f32 %v1483_v53, %v3113_v14  ;;  %v567_v0 = vpack.c.bf16 %v3045_v42, %v564_v55  ;;  %v1527_v23 = vunpack.c.l.bf16 %v2699_v6  ;;  %v2703_v55 = vld [vmem:[%s3653_s1 + $0xf0] sm:$0xff]  }
  0x35   :  { %2763 = vmatprep.mubr.msk.bf16.mxu0 %vm2228_vm1, %v3002_v11  ;;  %2772 = vmatprep.mubr.msk.bf16.mxu1 %vm2228_vm1, %v3004_v37  ;;  %v3008_v59 = vld [vmem:[#allocation7 + $0x34] ss:$8 sps:$4 sm:$0xff]   ;;  %v1465_v2 = vmax.f32 %v1461_v56, %v3126_v20  ;;  %v1514_v3 = vmax.f32 %v1511_v62, %v3128_v21  ;;  %v582_v5 = vmax.f32 %v573_v57, %v3115_v15  ;;  %v657_v11 = vunpack.c.h.bf16 %v2665_v48 }
  0x36   :  { %1440 = vst [vmem:[#allocation7 + $0xd0] sm:$0xf] %v1437_v60  ;;  %v1490_v7 = vpack.c.bf16 %v3045_v42, %v1487_v61  ;;  %v610_v9 = vsel %vm69_vm0, %v604_v58, %v3079_v1  ;;  %v635_v10 = vmax.f32 %v626_v63, %v3115_v15  ;;  %570 = vst [vmem:[#allocation7 + $0x4c] sm:$0xf] %v567_v0  ;;  %v1558_v24 = vunpack.c.h.bf16 %v2699_v6  ;;  %v2705_v60 = vld [vmem:[%s3653_s1 + $0xf8] sm:$0xff]  }
  0x37   :  { %v1468_v12 = vpack.c.bf16 %v3045_v42, %v1465_v2  ;;  %v1518_v13 = vmax.f32 %v1514_v3, %v3126_v20  ;;  %v586_v16 = vmax.f32 %v582_v5, %v3113_v14  ;;  %v613_v17 = vmax.f32 %v610_v9, %v3128_v21  ;;  %v3013_v32 = vld [vmem:[#allocation7 + $0xc0] ss:$8 sps:$4 sm:$0xff]   ;;  %v2671_v9 = vld [vmem:[%s3653_s1 + $0x70] sm:$0xff]  }
  0x38   :  { %1493 = vst [vmem:[#allocation7 + $0xd8] sm:$0xf] %v1490_v7  ;;  %v639_v19 = vmax.f32 %v635_v10, %v3113_v14  ;;  %v663_v22 = vsel %vm69_vm0, %v657_v11, %v3079_v1  ;;  %v1536_v34 = vmax.f32 %v1527_v23, %v3115_v15  ;;  %v1564_v35 = vsel %vm69_vm0, %v1558_v24, %v3079_v1  ;;  %v2673_v24 = vld [vmem:[%s3653_s1 + $0x78] sm:$0xff]  }
  0x39   :  { %1471 = vst [vmem:[#allocation7 + $0xd4] sm:$0xf] %v1468_v12  ;;  %v1521_v4 = vpack.c.bf16 %v3045_v42, %v1518_v13  ;;  %v589_v26 = vpack.c.bf16 %v3045_v42, %v586_v16  ;;  %v617_v27 = vmax.f32 %v613_v17, %v3126_v20  ;;  %v666_v28 = vmax.f32 %v663_v22, %v3128_v21 }
  0x3a   :  { %v3010_v31 = vld [vmem:[#allocation7 + $0xc4] ss:$8 sps:$4 sm:$0xff]   ;;  %v642_v33 = vpack.c.bf16 %v3045_v42, %v639_v19  ;;  %v1580_v36 = vunpack.c.l.bf16 %v2701_v18  ;;  %v1567_v39 = vmax.f32 %v1564_v35, %v3128_v21  ;;  %v1611_v40 = vunpack.c.h.bf16 %v2701_v18 }
  0x3b   :  { %1524 = vst [vmem:[#allocation7 + $0xdc] sm:$0xf] %v1521_v4  ;;  %592 = vst [vmem:[#allocation7 + $0x50] sm:$0xf] %v589_v26  ;;  %v620_v37 = vpack.c.bf16 %v3045_v42, %v617_v27  ;;  %v670_v38 = vmax.f32 %v666_v28, %v3126_v20  ;;  %v1540_v41 = vmax.f32 %v1536_v34, %v3113_v14  ;;  %v679_v44 = vunpack.c.l.bf16 %v2667_v29  ;;  %v3018_v2 = vld [vmem:[#allocation7 + $0x40] ss:$8 sps:$4 sm:$0xff]  }
  0x3c   :  { %2332 = vmatmul.mubr.bf16.gmra.mxu0 %v3006_v49  ;;  %2404 = vmatmul.mubr.bf16.gmra.mxu1 %v3007_v50  ;;  %645 = vst [vmem:[#allocation7 + $0x58] sm:$0xf] %v642_v33  ;;  %v1589_v43 = vmax.f32 %v1580_v36, %v3115_v15  ;;  %v710_v45 = vunpack.c.h.bf16 %v2667_v29  ;;  %v1571_v47 = vmax.f32 %v1567_v39, %v3126_v20  ;;  %v732_v49 = vunpack.c.l.bf16 %v2669_v30 }
  0x3d   :  { %2764 = vmatprep.mubr.msk.bf16.mxu0 %vm2228_vm1, %v3008_v59  ;;  %2773 = vmatprep.mubr.msk.bf16.mxu1 %vm2228_vm1, %v3010_v31  ;;  %623 = vst [vmem:[#allocation7 + $0x54] sm:$0xf] %v620_v37  ;;  %v673_v46 = vpack.c.bf16 %v3045_v42, %v670_v38  ;;  %v1617_v48 = vsel %vm69_vm0, %v1611_v40, %v3079_v1  ;;  %v3014_v50 = vld [vmem:[#allocation7 + $0x44] ss:$8 sps:$4 sm:$0xff]   ;;  %v763_v54 = vunpack.c.h.bf16 %v2669_v30  ;;  %v1633_v7 = vunpack.c.l.bf16 %v2703_v55 }
  0x3e   :  { %v1543_v51 = vpack.c.bf16 %v3045_v42, %v1540_v41  ;;  %v1593_v52 = vmax.f32 %v1589_v43, %v3113_v14  ;;  %v1620_v53 = vmax.f32 %v1617_v48, %v3128_v21  ;;  %v1574_v56 = vpack.c.bf16 %v3045_v42, %v1571_v47  ;;  %v2707_v41 = vld [vmem:[%s3653_s1 + $0x100] sm:$0xff]  }
  0x3f   :  { %676 = vst [vmem:[#allocation7 + $0x5c] sm:$0xf] %v673_v46  ;;  %v688_v57 = vmax.f32 %v679_v44, %v3115_v15  ;;  %v716_v58 = vsel %vm69_vm0, %v710_v45, %v3079_v1  ;;  %v741_v59 = vmax.f32 %v732_v49, %v3115_v15  ;;  %v769_v0 = vsel %vm69_vm0, %v763_v54, %v3079_v1  ;;  %v3019_v11 = vld [vmem:[#allocation7 + $0xd0] ss:$8 sps:$4 sm:$0xff]  }
  0x40   :  { %1546 = vst [vmem:[#allocation7 + $0xe0] sm:$0xf] %v1543_v51  ;;  %v1596_v61 = vpack.c.bf16 %v3045_v42, %v1593_v52  ;;  %v1624_v62 = vmax.f32 %v1620_v53, %v3126_v20  ;;  %v719_v63 = vmax.f32 %v716_v58, %v3128_v21  ;;  %1577 = vst [vmem:[#allocation7 + $0xe4] sm:$0xf] %v1574_v56  ;;  %v1664_v16 = vunpack.c.h.bf16 %v2703_v55  ;;  %v2709_v51 = vld [vmem:[%s3653_s1 + $0x108] sm:$0xff]  }
  0x41   :  { %v692_v3 = vmax.f32 %v688_v57, %v3113_v14  ;;  %v745_v5 = vmax.f32 %v741_v59, %v3113_v14  ;;  %v772_v6 = vmax.f32 %v769_v0, %v3128_v21  ;;  %v1686_v17 = vunpack.c.l.bf16 %v2705_v60  ;;  %v2675_v57 = vld [vmem:[%s3653_s1 + $0x80] sm:$0xff]  }
  0x42   :  { %v3016_v10 = vld [vmem:[#allocation7 + $0xd4] ss:$8 sps:$4 sm:$0xff]   ;;  %1599 = vst [vmem:[#allocation7 + $0xe8] sm:$0xf] %v1596_v61  ;;  %v1627_v12 = vpack.c.bf16 %v3045_v42, %v1624_v62  ;;  %v723_v13 = vmax.f32 %v719_v63, %v3126_v20  ;;  %v1642_v23 = vmax.f32 %v1633_v7, %v3115_v15  ;;  %v1670_v4 = vsel %vm69_vm0, %v1664_v16, %v3079_v1 }
  0x43   :  { %v695_v18 = vpack.c.bf16 %v3045_v42, %v692_v3  ;;  %v748_v19 = vpack.c.bf16 %v3045_v42, %v745_v5  ;;  %v776_v22 = vmax.f32 %v772_v6, %v3126_v20  ;;  %v1695_v26 = vmax.f32 %v1686_v17, %v3115_v15  ;;  %v3024_v52 = vld [vmem:[#allocation7 + $0x50] ss:$8 sps:$4 sm:$0xff]   ;;  %v2677_v6 = vld [vmem:[%s3653_s1 + $0x88] sm:$0xff]  }
  0x44   :  { %2340 = vmatmul.mubr.bf16.gmra.mxu0 %v3012_v25  ;;  %2412 = vmatmul.mubr.bf16.gmra.mxu1 %v3013_v32  ;;  %1630 = vst [vmem:[#allocation7 + $0xec] sm:$0xf] %v1627_v12  ;;  %v726_v25 = vpack.c.bf16 %v3045_v42, %v723_v13  ;;  %v1717_v27 = vunpack.c.h.bf16 %v2705_v60  ;;  %v1646_v29 = vmax.f32 %v1642_v23, %v3113_v14  ;;  %v785_v31 = vunpack.c.l.bf16 %v2671_v9 }
  0x45   :  { %2765 = vmatprep.mubr.msk.bf16.mxu0 %vm2228_vm1, %v3014_v50  ;;  %2774 = vmatprep.mubr.msk.bf16.mxu1 %vm2228_vm1, %v3016_v10  ;;  %698 = vst [vmem:[#allocation7 + $0x60] sm:$0xf] %v695_v18  ;;  %751 = vst [vmem:[#allocation7 + $0x68] sm:$0xf] %v748_v19  ;;  %v779_v28 = vpack.c.bf16 %v3045_v42, %v776_v22  ;;  %v1673_v30 = vmax.f32 %v1670_v4, %v3128_v21  ;;  %v816_v35 = vunpack.c.h.bf16 %v2671_v9 }
  0x46   :  { %v3020_v32 = vld [vmem:[#allocation7 + $0x54] ss:$8 sps:$4 sm:$0xff]   ;;  %729 = vst [vmem:[#allocation7 + $0x64] sm:$0xf] %v726_v25  ;;  %v1699_v33 = vmax.f32 %v1695_v26, %v3113_v14  ;;  %v1723_v34 = vsel %vm69_vm0, %v1717_v27, %v3079_v1  ;;  %v838_v36 = vunpack.c.l.bf16 %v2673_v24  ;;  %v1649_v37 = vpack.c.bf16 %v3045_v42, %v1646_v29 }
  0x47   :  { %782 = vst [vmem:[#allocation7 + $0x6c] sm:$0xf] %v779_v28  ;;  %v1677_v38 = vmax.f32 %v1673_v30, %v3126_v20  ;;  %v1726_v39 = vmax.f32 %v1723_v34, %v3128_v21  ;;  %v794_v40 = vmax.f32 %v785_v31, %v3115_v15  ;;  %v822_v44 = vsel %vm69_vm0, %v816_v35, %v3079_v1  ;;  %v2711_v28 = vld [vmem:[%s3653_s1 + $0x110] sm:$0xff]  }
  0x48   :  { %v1702_v43 = vpack.c.bf16 %v3045_v42, %v1699_v33  ;;  %v847_v45 = vmax.f32 %v838_v36, %v3115_v15  ;;  %v869_v46 = vunpack.c.h.bf16 %v2673_v24  ;;  %1652 = vst [vmem:[#allocation7 + $0xf0] sm:$0xf] %v1649_v37  ;;  %v825_v50 = vmax.f32 %v822_v44, %v3128_v21 }
  0x49   :  { %v1680_v47 = vpack.c.bf16 %v3045_v42, %v1677_v38  ;;  %v1730_v48 = vmax.f32 %v1726_v39, %v3126_v20  ;;  %v798_v49 = vmax.f32 %v794_v40, %v3113_v14  ;;  %v1739_v55 = vunpack.c.l.bf16 %v2707_v41  ;;  %v3025_v59 = vld [vmem:[#allocation7 + $0xe0] ss:$8 sps:$4 sm:$0xff]   ;;  %v2713_v38 = vld [vmem:[%s3653_s1 + $0x118] sm:$0xff]  }
  0x4a   :  { %1705 = vst [vmem:[#allocation7 + $0xf8] sm:$0xf] %v1702_v43  ;;  %v851_v53 = vmax.f32 %v847_v45, %v3113_v14  ;;  %v875_v54 = vsel %vm69_vm0, %v869_v46, %v3079_v1  ;;  %v1770_v56 = vunpack.c.h.bf16 %v2707_v41  ;;  %v829_v62 = vmax.f32 %v825_v50, %v3126_v20 }
  0x4b   :  { %v3022_v58 = vld [vmem:[#allocation7 + $0xe4] ss:$8 sps:$4 sm:$0xff]   ;;  %1683 = vst [vmem:[#allocation7 + $0xf4] sm:$0xf] %v1680_v47  ;;  %v1733_v60 = vpack.c.bf16 %v3045_v42, %v1730_v48  ;;  %v801_v61 = vpack.c.bf16 %v3045_v42, %v798_v49  ;;  %v878_v63 = vmax.f32 %v875_v54, %v3128_v21  ;;  %v1792_v5 = vunpack.c.l.bf16 %v2709_v51 }
  0x4c   :  { %2348 = vmatmul.mubr.bf16.gmra.mxu0 %v3018_v2  ;;  %2420 = vmatmul.mubr.bf16.gmra.mxu1 %v3019_v11  ;;  %v854_v0 = vpack.c.bf16 %v3045_v42, %v851_v53  ;;  %v1748_v2 = vmax.f32 %v1739_v55, %v3115_v15  ;;  %v1776_v3 = vsel %vm69_vm0, %v1770_v56, %v3079_v1  ;;  %v1823_v11 = vunpack.c.h.bf16 %v2709_v51  ;;  %v3030_v33 = vld [vmem:[#allocation7 + $0x60] ss:$8 sps:$4 sm:$0xff]  }
  0x4d   :  { %2766 = vmatprep.mubr.msk.bf16.mxu0 %vm2228_vm1, %v3020_v32  ;;  %2775 = vmatprep.mubr.msk.bf16.mxu1 %vm2228_vm1, %v3022_v58  ;;  %1736 = vst [vmem:[#allocation7 + $0xfc] sm:$0xf] %v1733_v60  ;;  %804 = vst [vmem:[#allocation7 + $0x70] sm:$0xf] %v801_v61  ;;  %v832_v7 = vpack.c.bf16 %v3045_v42, %v829_v62  ;;  %v882_v9 = vmax.f32 %v878_v63, %v3126_v20  ;;  %v891_v17 = vunpack.c.l.bf16 %v2675_v57 }
  0x4e   :  { %v1779_v10 = vmax.f32 %v1776_v3, %v3128_v21  ;;  %v3026_v12 = vld [vmem:[#allocation7 + $0x64] ss:$8 sps:$4 sm:$0xff]   ;;  %857 = vst [vmem:[#allocation7 + $0x78] sm:$0xf] %v854_v0  ;;  %v1752_v13 = vmax.f32 %v1748_v2, %v3113_v14  ;;  %v1801_v16 = vmax.f32 %v1792_v5, %v3115_v15  ;;  %v922_v18 = vunpack.c.h.bf16 %v2675_v57 }
  0x4f   :  { %835 = vst [vmem:[#allocation7 + $0x74] sm:$0xf] %v832_v7  ;;  %v885_v19 = vpack.c.bf16 %v3045_v42, %v882_v9  ;;  %v1829_v23 = vsel %vm69_vm0, %v1823_v11, %v3079_v1  ;;  %v944_v24 = vunpack.c.l.bf16 %v2677_v6  ;;  %v900_v27 = vmax.f32 %v891_v17, %v3115_v15 }
  0x50   :  { %v1783_v22 = vmax.f32 %v1779_v10, %v3126_v20  ;;  %v1755_v25 = vpack.c.bf16 %v3045_v42, %v1752_v13  ;;  %v1805_v4 = vmax.f32 %v1801_v16, %v3113_v14  ;;  %v1832_v26 = vmax.f32 %v1829_v23, %v3128_v21 }
  0x51   :  { %888 = vst [vmem:[#allocation7 + $0x7c] sm:$0xf] %v885_v19  ;;  %v928_v30 = vsel %vm69_vm0, %v922_v18, %v3079_v1  ;;  %v953_v31 = vmax.f32 %v944_v24, %v3115_v15  ;;  %v975_v32 = vunpack.c.h.bf16 %v2677_v6  ;;  %v904_v36 = vmax.f32 %v900_v27, %v3113_v14  ;;  %v3031_v45 = vld [vmem:[#allocation7 + $0xf0] ss:$8 sps:$4 sm:$0xff]  }
  0x52   :  { %v1786_v29 = vpack.c.bf16 %v3045_v42, %v1783_v22  ;;  %1758 = vst [vmem:[#allocation7 + $0x100] sm:$0xf] %v1755_v25  ;;  %v1808_v34 = vpack.c.bf16 %v3045_v42, %v1805_v4  ;;  %v1836_v35 = vmax.f32 %v1832_v26, %v3126_v20  ;;  %v931_v37 = vmax.f32 %v928_v30, %v3128_v21 }
  0x53   :  { %v957_v39 = vmax.f32 %v953_v31, %v3113_v14  ;;  %v981_v40 = vsel %vm69_vm0, %v975_v32, %v3079_v1  ;;  %v1845_v41 = vunpack.c.l.bf16 %v2711_v28  ;;  %v1876_v43 = vunpack.c.h.bf16 %v2711_v28 }
  0x54   :  { %2356 = vmatmul.mubr.bf16.gmra.mxu0 %v3024_v52  ;;  %2428 = vmatmul.mubr.bf16.gmra.mxu1 %v3025_v59  ;;  %1789 = vst [vmem:[#allocation7 + $0x104] sm:$0xf] %v1786_v29  ;;  %v3028_v44 = vld [vmem:[#allocation7 + $0xf4] ss:$8 sps:$4 sm:$0xff]   ;;  %1811 = vst [vmem:[#allocation7 + $0x108] sm:$0xf] %v1808_v34  ;;  %v1839_v46 = vpack.c.bf16 %v3045_v42, %v1836_v35  ;;  %v907_v47 = vpack.c.bf16 %v3045_v42, %v904_v36  ;;  %v1898_v53 = vunpack.c.l.bf16 %v2713_v38 }
  0x55   :  { %2767 = vmatprep.mubr.msk.bf16.mxu0 %vm2228_vm1, %v3026_v12  ;;  %v935_v48 = vmax.f32 %v931_v37, %v3126_v20  ;;  %v984_v49 = vmax.f32 %v981_v40, %v3128_v21  ;;  %v960_v50 = vpack.c.bf16 %v3045_v42, %v957_v39  ;;  %v1854_v51 = vmax.f32 %v1845_v41, %v3115_v15  ;;  %v3036_v5 = vld [vmem:[#allocation7 + $0x70] ss:$8 sps:$4 sm:$0xff]  }
  0x56   :  { %v1882_v52 = vsel %vm69_vm0, %v1876_v43, %v3079_v1  ;;  %2776 = vmatprep.mubr.msk.bf16.mxu1 %vm2228_vm1, %v3028_v44  ;;  %1842 = vst [vmem:[#allocation7 + $0x10c] sm:$0xf] %v1839_v46  ;;  %910 = vst [vmem:[#allocation7 + $0x80] sm:$0xf] %v907_v47  ;;  %v1929_v57 = vunpack.c.h.bf16 %v2713_v38  ;;  %v1907_v59 = vmax.f32 %v1898_v53, %v3115_v15 }
  0x57   :  { %v938_v54 = vpack.c.bf16 %v3045_v42, %v935_v48  ;;  %v988_v55 = vmax.f32 %v984_v49, %v3126_v20  ;;  %v1885_v56 = vmax.f32 %v1882_v52, %v3128_v21  ;;  %963 = vst [vmem:[#allocation7 + $0x88] sm:$0xf] %v960_v50  ;;  %v1858_v58 = vmax.f32 %v1854_v51, %v3113_v14 }
  0x58   :  { %v3032_v60 = vld [vmem:[#allocation7 + $0x74] ss:$8 sps:$4 sm:$0xff]   ;;  %v1935_v63 = vsel %vm69_vm0, %v1929_v57, %v3079_v1  ;;  %v1911_v2 = vmax.f32 %v1907_v59, %v3113_v14 }
  0x59   :  { %941 = vst [vmem:[#allocation7 + $0x84] sm:$0xf] %v938_v54  ;;  %v991_v61 = vpack.c.bf16 %v3045_v42, %v988_v55  ;;  %v1889_v62 = vmax.f32 %v1885_v56, %v3126_v20  ;;  %v1861_v0 = vpack.c.bf16 %v3045_v42, %v1858_v58  ;;  %v1938_v3 = vmax.f32 %v1935_v63, %v3128_v21 }
  0x5a   :  { %v1914_v6 = vpack.c.bf16 %v3045_v42, %v1911_v2 }
  0x5b   :  { %994 = vst [vmem:[#allocation7 + $0x8c] sm:$0xf] %v991_v61  ;;  %v1892_v15 = vpack.c.bf16 %v3045_v42, %v1889_v62  ;;  %1864 = vst [vmem:[#allocation7 + $0x110] sm:$0xf] %v1861_v0  ;;  %v1942_v7 = vmax.f32 %v1938_v3, %v3126_v20  ;;  %v3037_v1 = vld [vmem:[#allocation7 + $0x100] ss:$8 sps:$4 sm:$0xff]  }
  0x5c   :  { %2364 = vmatmul.mubr.bf16.gmra.mxu0 %v3030_v33  ;;  %2436 = vmatmul.mubr.bf16.gmra.mxu1 %v3031_v45  ;;  %1917 = vst [vmem:[#allocation7 + $0x118] sm:$0xf] %v1914_v6 }
  0x5d   :  { %2768 = vmatprep.mubr.msk.bf16.mxu0 %vm2228_vm1, %v3032_v60  ;;  %1895 = vst [vmem:[#allocation7 + $0x114] sm:$0xf] %v1892_v15  ;;  %v3034_v8 = vld [vmem:[#allocation7 + $0x104] ss:$8 sps:$4 sm:$0xff]   ;;  %v1945_v9 = vpack.c.bf16 %v3045_v42, %v1942_v7 }
  0x5e   :  { %2777 = vmatprep.mubr.msk.bf16.mxu1 %vm2228_vm1, %v3034_v8  ;;  %v3042_v21 = vld [vmem:[#allocation7 + $0x80] ss:$8 sps:$4 sm:$0xff]  }
  0x5f   :  { %1948 = vst [vmem:[#allocation7 + $0x11c] sm:$0xf] %v1945_v9 }
  0x62   :  { %v3038_v14 = vld [vmem:[#allocation7 + $0x84] ss:$8 sps:$4 sm:$0xff]  }
  0x63   :  { %v3043_v11 = vld [vmem:[#allocation7 + $0x110] ss:$8 sps:$4 sm:$0xff]  }
  0x64   :  { %2372 = vmatmul.mubr.bf16.gmra.mxu0 %v3036_v5  ;;  %2444 = vmatmul.mubr.bf16.gmra.mxu1 %v3037_v1 }
  0x65   :  { %2769 = vmatprep.mubr.msk.bf16.mxu0 %vm2228_vm1, %v3038_v14 }
  0x66   :  { %v3040_v10 = vld [vmem:[#allocation7 + $0x114] ss:$8 sps:$4 sm:$0xff]  }
  0x67   :  { %2778 = vmatprep.mubr.msk.bf16.mxu1 %vm2228_vm1, %v3040_v10 }
  0x6c   :  { %2380 = vmatmul.mubr.bf16.gmra.mxu0 %v3042_v21  ;;  %2452 = vmatmul.mubr.bf16.gmra.mxu1 %v3043_v11 }
  0xec   :  { %v2317_v20 = vpop.f32.mrf.mxu0  ;;  %v2389_v12 = vpop.f32.mrf.mxu1 }
  0xee   :  { %v2319_v13 = vpop.f32.mrf.mxu0  ;;  %v2391_v16 = vpop.f32.mrf.mxu1 }
  0xf0   :  { %v2320_v42 = vpop.f32.mrf.mxu0  ;;  %v2392_v17 = vpop.f32.mrf.mxu1 }
  0xf1   :  { %v2854_v18 = vpack.c.bf16 %v2320_v42, %v2317_v20  ;;  %v2899_v19 = vpack.c.bf16 %v2392_v17, %v2389_v12 }
  0xf2   :  { %v2322_v22 = vpop.f32.mrf.mxu0  ;;  %v2394_v23 = vpop.f32.mrf.mxu1 }
  0xf3   :  { %2855 = vst [vmem:[%s3657_s5] sm:$0xff] %v2854_v18   ;;  %2949 = vst [vmem:[%s3657_s5 + $0x48] sm:$0xff] %v2899_v19  }
  0xf4   :  { %v2325_v24 = vpop.f32.mrf.mxu0  ;;  %v2397_v25 = vpop.f32.mrf.mxu1 }
  0xf6   :  { %v2327_v4 = vpop.f32.mrf.mxu0  ;;  %v2399_v26 = vpop.f32.mrf.mxu1 }
  0xf8   :  { %v2328_v27 = vpop.f32.mrf.mxu0  ;;  %v2400_v28 = vpop.f32.mrf.mxu1 }
  0xf9   :  { %v2859_v29 = vpack.c.bf16 %v2328_v27, %v2325_v24  ;;  %v2904_v30 = vpack.c.bf16 %v2400_v28, %v2397_v25 }
  0xfa   :  { %v2330_v31 = vpop.f32.mrf.mxu0  ;;  %v2402_v32 = vpop.f32.mrf.mxu1 }
  0xfb   :  { %2941 = vst [vmem:[%s3657_s5 + $0x8] sm:$0xff] %v2859_v29   ;;  %2950 = vst [vmem:[%s3657_s5 + $0x50] sm:$0xff] %v2904_v30  }
  0xfc   :  { %v2333_v33 = vpop.f32.mrf.mxu0  ;;  %v2405_v34 = vpop.f32.mrf.mxu1 }
  0xfe   :  { %v2335_v35 = vpop.f32.mrf.mxu0  ;;  %v2407_v36 = vpop.f32.mrf.mxu1 }
 0x100   :  { %v2336_v37 = vpop.f32.mrf.mxu0  ;;  %v2408_v38 = vpop.f32.mrf.mxu1 }
 0x101   :  { %v2864_v39 = vpack.c.bf16 %v2336_v37, %v2333_v33  ;;  %v2909_v40 = vpack.c.bf16 %v2408_v38, %v2405_v34 }
 0x102   :  { %v2338_v41 = vpop.f32.mrf.mxu0  ;;  %v2410_v43 = vpop.f32.mrf.mxu1 }
 0x103   :  { %2942 = vst [vmem:[%s3657_s5 + $0x10] sm:$0xff] %v2864_v39   ;;  %2951 = vst [vmem:[%s3657_s5 + $0x58] sm:$0xff] %v2909_v40  }
 0x104   :  { %v2341_v44 = vpop.f32.mrf.mxu0  ;;  %v2413_v45 = vpop.f32.mrf.mxu1 }
 0x106   :  { %v2343_v46 = vpop.f32.mrf.mxu0  ;;  %v2415_v47 = vpop.f32.mrf.mxu1 }
 0x108   :  { %v2344_v48 = vpop.f32.mrf.mxu0  ;;  %v2416_v49 = vpop.f32.mrf.mxu1 }
 0x109   :  { %v2869_v50 = vpack.c.bf16 %v2344_v48, %v2341_v44  ;;  %v2914_v51 = vpack.c.bf16 %v2416_v49, %v2413_v45 }
 0x10a   :  { %v2346_v52 = vpop.f32.mrf.mxu0  ;;  %v2418_v53 = vpop.f32.mrf.mxu1 }
 0x10b   :  { %2943 = vst [vmem:[%s3657_s5 + $0x18] sm:$0xff] %v2869_v50   ;;  %2952 = vst [vmem:[%s3657_s5 + $0x60] sm:$0xff] %v2914_v51  }
 0x10c   :  { %v2349_v54 = vpop.f32.mrf.mxu0  ;;  %v2421_v55 = vpop.f32.mrf.mxu1 }
 0x10e   :  { %v2351_v56 = vpop.f32.mrf.mxu0  ;;  %v2423_v57 = vpop.f32.mrf.mxu1 }
 0x110   :  { %v2352_v58 = vpop.f32.mrf.mxu0  ;;  %v2424_v59 = vpop.f32.mrf.mxu1 }
 0x111   :  { %v2874_v60 = vpack.c.bf16 %v2352_v58, %v2349_v54  ;;  %v2919_v61 = vpack.c.bf16 %v2424_v59, %v2421_v55 }
 0x112   :  { %v2354_v62 = vpop.f32.mrf.mxu0  ;;  %v2426_v63 = vpop.f32.mrf.mxu1 }
 0x113   :  { %2944 = vst [vmem:[%s3657_s5 + $0x20] sm:$0xff] %v2874_v60   ;;  %2953 = vst [vmem:[%s3657_s5 + $0x68] sm:$0xff] %v2919_v61  }
 0x114   :  { %v2357_v0 = vpop.f32.mrf.mxu0  ;;  %v2429_v2 = vpop.f32.mrf.mxu1 }
 0x116   :  { %v2359_v3 = vpop.f32.mrf.mxu0  ;;  %v2431_v5 = vpop.f32.mrf.mxu1 }
 0x118   :  { %v2360_v15 = vpop.f32.mrf.mxu0  ;;  %v2432_v6 = vpop.f32.mrf.mxu1 }
 0x119   :  { %v2879_v7 = vpack.c.bf16 %v2360_v15, %v2357_v0  ;;  %v2924_v8 = vpack.c.bf16 %v2432_v6, %v2429_v2 }
 0x11a   :  { %v2362_v1 = vpop.f32.mrf.mxu0  ;;  %v2434_v9 = vpop.f32.mrf.mxu1 }
 0x11b   :  { %2945 = vst [vmem:[%s3657_s5 + $0x28] sm:$0xff] %v2879_v7   ;;  %2954 = vst [vmem:[%s3657_s5 + $0x70] sm:$0xff] %v2924_v8  }
 0x11c   :  { %v2365_v14 = vpop.f32.mrf.mxu0  ;;  %v2437_v21 = vpop.f32.mrf.mxu1 }
 0x11e   :  { %v2367_v10 = vpop.f32.mrf.mxu0  ;;  %v2439_v11 = vpop.f32.mrf.mxu1 }
 0x120   :  { %v2368_v20 = vpop.f32.mrf.mxu0  ;;  %v2440_v13 = vpop.f32.mrf.mxu1 }
 0x121   :  { %v2884_v12 = vpack.c.bf16 %v2368_v20, %v2365_v14  ;;  %v2929_v16 = vpack.c.bf16 %v2440_v13, %v2437_v21 }
 0x122   :  { %v2370_v42 = vpop.f32.mrf.mxu0  ;;  %v2442_v17 = vpop.f32.mrf.mxu1 }
 0x123   :  { %2946 = vst [vmem:[%s3657_s5 + $0x30] sm:$0xff] %v2884_v12   ;;  %2955 = vst [vmem:[%s3657_s5 + $0x78] sm:$0xff] %v2929_v16  }
 0x124   :  { %v2373_v18 = vpop.f32.mrf.mxu0  ;;  %v2445_v19 = vpop.f32.mrf.mxu1 }
 0x126   :  { %v2375_v22 = vpop.f32.mrf.mxu0  ;;  %v2447_v23 = vpop.f32.mrf.mxu1 }
 0x128   :  { %v2376_v24 = vpop.f32.mrf.mxu0  ;;  %v2448_v4 = vpop.f32.mrf.mxu1 }
 0x129   :  { %v2889_v25 = vpack.c.bf16 %v2376_v24, %v2373_v18  ;;  %v2934_v27 = vpack.c.bf16 %v2448_v4, %v2445_v19 }
 0x12a   :  { %v2378_v26 = vpop.f32.mrf.mxu0  ;;  %v2450_v28 = vpop.f32.mrf.mxu1 }
 0x12b   :  { %2947 = vst [vmem:[%s3657_s5 + $0x38] sm:$0xff] %v2889_v25   ;;  %2956 = vst [vmem:[%s3657_s5 + $0x80] sm:$0xff] %v2934_v27  }
 0x12c   :  { %v2381_v29 = vpop.f32.mrf.mxu0  ;;  %v2453_v31 = vpop.f32.mrf.mxu1 }
 0x12e   :  { %v2383_v30 = vpop.f32.mrf.mxu0  ;;  %v2455_v33 = vpop.f32.mrf.mxu1 }
 0x130   :  { %v2384_v32 = vpop.f32.mrf.mxu0  ;;  %v2456_v36 = vpop.f32.mrf.mxu1 }
 0x131   :  { %v2894_v34 = vpack.c.bf16 %v2384_v32, %v2381_v29  ;;  %v2939_v37 = vpack.c.bf16 %v2456_v36, %v2453_v31 }
 0x132   :  { %v2386_v35 = vpop.f32.mrf.mxu0  ;;  %v2458_v38 = vpop.f32.mrf.mxu1 }
 0x133   :  { %2948 = vst [vmem:[%s3657_s5 + $0x40] sm:$0xff] %v2894_v34   ;;  %2957 = vst [vmem:[%s3657_s5 + $0x88] sm:$0xff] %v2939_v37  }

</bundles_post_ra>
